<compile_context>
chip_gen: v6e
topology: v6e:2x2x1
jax: 0.10.0
libtpu: 0.0.40
codegen_flags: <defaults>
</compile_context>

<pallas_src>
import jax
import jax.numpy as jnp
from jax.experimental import pallas as pl
from jax.experimental.pallas import tpu as pltpu

NEG_SLOPE = 0.2    # LeakyReLU(negative_slope=0.2) used throughout the module
TN = 1152          # output (lane) tile width; 4608 / 1152 = 4 grid steps


# ----------------------------------------------------------------------------
# Kernel
# ----------------------------------------------------------------------------
def _fused_embed_kernel(x_ref, w_ref, b_ref, y_ref):
    """One N-tile of the fused (encoder+decoder) embedding layers.

        y1 = LeakyReLU( x        @ W1 + b1 )      (Linear1 branch)
        y2 = LeakyReLU( relu(x)  @ W2 + b2 )      (ReLU -> Linear2 branch)

    x_ref : (B, K)        f32   VMEM-resident across grid steps
    w_ref : (2, K, TN)    bf16  pipelined weight tile (W1 = [0], W2 = [1])
    b_ref : (2, 1, Npad)  f32   VMEM-resident, sliced per tile
    y_ref : (2, B, TN)    f32   packed lane-dense outputs (y1 = [0], y2 = [1])
    """
    j = pl.program_id(0)
    tn = y_ref.shape[2]
    off = pl.multiple_of(j * tn, 128)

    x = x_ref[...]                                      # (B, K) f32
    xb = x.astype(jnp.bfloat16)
    xrb = jnp.maximum(x, 0.0).astype(jnp.bfloat16)

    b1 = b_ref[0, :, pl.ds(off, tn)]                    # (1, TN) f32
    b2 = b_ref[1, :, pl.ds(off, tn)]

    y1 = jnp.dot(xb, w_ref[0], preferred_element_type=jnp.float32) + b1
    y2 = jnp.dot(xrb, w_ref[1], preferred_element_type=jnp.float32) + b2

    # LeakyReLU(0.2), lane-dense stores.
    y_ref[0, :, :] = jnp.where(y1 >= 0.0, y1, NEG_SLOPE * y1)
    y_ref[1, :, :] = jnp.where(y2 >= 0.0, y2, NEG_SLOPE * y2)


def fused_embedding_call(x, w_packed, b_packed, tn=TN):
    """Single pallas_call for ALL embedding blocks (encoder + decoder fused).

    x        : (B, K)         f32
    w_packed : (2, K, Npad)   bf16  (W1cat / W2cat stacked on axis 0)
    b_packed : (2, 1, Npad)   f32   (b1cat / b2cat stacked on axis 0)
    returns  : (2, B, Npad)   f32, lane-dense ([0] = Linear1 branch,
                                               [1] = ReLU->Linear2 branch)
    """
    B, K = x.shape
    Npad = w_packed.shape[-1]
    assert Npad % tn == 0, (Npad, tn)
    grid = (Npad // tn,)

    flops = 2 * 2 * B * K * Npad                       # two matmul branches
    bytes_accessed = (B * K * 4                        # x (f32, resident)
                      + 2 * K * Npad * 2               # W1cat + W2cat (bf16)
                      + 2 * Npad * 4                   # biases (f32)
                      + 2 * B * Npad * 4)              # y1 + y2 (f32)
    cost = pl.CostEstimate(flops=flops, transcendentals=0,
                           bytes_accessed=bytes_accessed)

    grid_spec = pl.GridSpec(
        grid=grid,
        in_specs=[
            pl.BlockSpec((B, K), lambda j: (0, 0)),          # x: resident
            pl.BlockSpec((2, K, tn), lambda j: (0, 0, j)),   # W tile (pipelined)
            pl.BlockSpec((2, 1, Npad), lambda j: (0, 0, 0)), # biases: resident
        ],
        out_specs=pl.BlockSpec((2, B, tn), lambda j: (0, 0, j)),
    )

    return pl.pallas_call(
        _fused_embed_kernel,
        out_shape=jax.ShapeDtypeStruct((2, B, Npad), jnp.float32),
        grid_spec=grid_spec,
        compiler_params=pltpu.CompilerParams(
            dimension_semantics=("parallel",)),   # v7x: 2 TCs split the 4 tiles
        cost_estimate=cost,
    )(x, w_packed, b_packed)


# ----------------------------------------------------------------------------
# Parameter construction / fusion
# ----------------------------------------------------------------------------
def _init_linear(key, in_f, out_f):
    """Deterministic init mimicking PyTorch nn.Linear default (uniform +-1/sqrt(in)).

    Weight is stored pre-transposed as (in_f, out_f) so the kernel does x @ W.
    """
    kw, kb = jax.random.split(key)
    bound = 1.0 / jnp.sqrt(jnp.float32(in_f))
    w = jax.random.uniform(kw, (in_f, out_f), jnp.float32, -bound, bound)
    b = jax.random.uniform(kb, (1, out_f), jnp.float32, -bound, bound)
    return w, b


def make_block_params(key, mid_features, out_sizes):
    """Per-Embedding_Block params: list of (w1, b1, w2, b2)."""
    blocks = []
    for n in out_sizes:
        key, k1, k2 = jax.random.split(key, 3)
        w1, b1 = _init_linear(k1, mid_features, n)     # Linear1
        w2, b2 = _init_linear(k2, mid_features, n)     # Linear2 (after ReLU)
        blocks.append((w1, b1, w2, b2))
    return blocks


def fuse_all_params(layer_blocks_list, tn=TN, weight_dtype=jnp.bfloat16):
    """Concatenate every block of every layer on the output axis, zero-pad to
    a multiple of tn, and pack (W1,W2) / (b1,b2) into single arrays."""
    w1s, b1s, w2s, b2s = [], [], [], []
    for blocks in layer_blocks_list:
        for (w1, b1, w2, b2) in blocks:
            w1s.append(w1); b1s.append(b1); w2s.append(w2); b2s.append(b2)
    w1cat = jnp.concatenate(w1s, axis=1)
    b1cat = jnp.concatenate(b1s, axis=1)
    w2cat = jnp.concatenate(w2s, axis=1)
    b2cat = jnp.concatenate(b2s, axis=1)

    ncat = w1cat.shape[1]
    npad = tn * pl.cdiv(ncat, tn)
    pad = npad - ncat
    if pad:
        pc = ((0, 0), (0, pad))
        w1cat = jnp.pad(w1cat, pc)
        b1cat = jnp.pad(b1cat, pc)
        w2cat = jnp.pad(w2cat, pc)
        b2cat = jnp.pad(b2cat, pc)

    w_packed = jnp.stack([w1cat, w2cat], axis=0).astype(weight_dtype)  # (2,K,Npad)
    b_packed = jnp.stack([b1cat, b2cat], axis=0)                       # (2,1,Npad) f32
    return w_packed, b_packed


# ----------------------------------------------------------------------------
# Output splitting / layout glue
# ----------------------------------------------------------------------------
def split_layers(y_packed, layer_sizes):
    """Slice the fused lane-dense result back into per-layer / per-block pairs.

    y_packed : (2, B, Npad) f32
    returns  : [ [ (y1_i, y2_i) ... ] per layer ], each (B, out_i) f32.
    All split offsets are 128-aligned so the slices are cheap.
    """
    y1, y2 = y_packed[0], y_packed[1]
    layers, off = [], 0
    for sizes in layer_sizes:
        layer = []
        for n in sizes:
            layer.append((y1[:, off:off + n], y2[:, off:off + n]))
            off += n
        layers.append(layer)
    return layers


def to_torch_layout(outs):
    """Optional layout glue -> torch.cat([x1.unsqueeze(-1), x2.unsqueeze(-1)], -1).

    Produces (B, out_i, 2).  Downstream consumers that can take the lane-dense
    pairs directly should skip this (trailing dim of 2 forces masked stores).
    """
    return [jnp.stack([y1, y2], axis=-1) for (y1, y2) in outs]


# ----------------------------------------------------------------------------
# Pure-JAX reference (matches the PyTorch Embedding_Block forward, with the
# same bf16 weight quantization as the kernel so the comparison is tight)
# ----------------------------------------------------------------------------
def _reference(x, blocks):
    xb = x.astype(jnp.bfloat16).astype(jnp.float32)
    outs = []
    for (w1, b1, w2, b2) in blocks:
        w1b = w1.astype(jnp.bfloat16).astype(jnp.float32)
        w2b = w2.astype(jnp.bfloat16).astype(jnp.float32)
        y1 = jnp.dot(xb, w1b, precision=jax.lax.Precision.HIGHEST) + b1
        y2 = jnp.dot(jnp.maximum(xb, 0.0), w2b,
                     precision=jax.lax.Precision.HIGHEST) + b2
        y = jnp.stack([y1, y2], axis=-1)
        outs.append(jnp.where(y >= 0.0, y, NEG_SLOPE * y))
    return outs


# ----------------------------------------------------------------------------
# Main
# ----------------------------------------------------------------------------
if __name__ == "__main__":
    key = jax.random.PRNGKey(0)
    key, kx, ke, kd = jax.random.split(key, 4)

    B, MID = 1, 128                 # vec = nn.Parameter(torch.randn(1, 128))
    x = jax.random.normal(kx, (B, MID), jnp.float32)

    enc_sizes = (128, 256, 512, 512)            # Embedding_layer_Encoder
    dec_sizes = (1024, 1024, 512, 256, 128)     # Embedding_layer_Decoder

    enc_blocks = make_block_params(ke, MID, enc_sizes)
    dec_blocks = make_block_params(kd, MID, dec_sizes)

    # Fuse ALL blocks of BOTH layers (they share the same input vector).
    w_packed, b_packed = fuse_all_params([enc_blocks, dec_blocks], tn=TN)

    # ONE pallas_call for everything (was 2 calls / 9 calls before).
    y_packed = fused_embedding_call(x, w_packed, b_packed, tn=TN)
    jax.block_until_ready(y_packed)

    enc_out, dec_out = split_layers(y_packed, [enc_sizes, dec_sizes])

    # Torch-compatible (B, out_i, 2) layout only for the semantics check.
    enc_torch = to_torch_layout(enc_out)
    dec_torch = to_torch_layout(dec_out)
    for o in enc_torch + dec_torch:
        jax.block_until_ready(o)

    # Correctness vs. pure-JAX reference (same bf16 weight quantization).
    enc_ref = _reference(x, enc_blocks)
    dec_ref = _reference(x, dec_blocks)
    for o, r, n in zip(enc_torch, enc_ref, enc_sizes):
        assert o.shape == (B, n, 2), (o.shape, n)
        assert jnp.allclose(o, r, atol=1e-4, rtol=1e-4), \
            float(jnp.max(jnp.abs(o - r)))
    for o, r, n in zip(dec_torch, dec_ref, dec_sizes):
        assert o.shape == (B, n, 2), (o.shape, n)
        assert jnp.allclose(o, r, atol=1e-4, rtol=1e-4), \
            float(jnp.max(jnp.abs(o - r)))

    print("KERNEL_OK")
</pallas_src>

<mosaic_0001>
module attributes {stable_mosaic.version = 11 : i64} {
  func.func @_fused_embed_kernel(%arg0: i32, %arg1: memref<1x128xf32, #tpu.memory_space<vmem>>, %arg2: memref<2x128x1152xbf16, #tpu.memory_space<vmem>>, %arg3: memref<2x1x4608xf32, #tpu.memory_space<vmem>>, %arg4: memref<2x1x1152xf32, #tpu.memory_space<vmem>>) attributes {dimension_semantics = [#tpu.dimension_semantics<parallel>], iteration_bounds = array<i64: 4>, scalar_prefetch = 0 : i64, scratch_operands = 0 : i64, tpu.core_type = #tpu.core_type<tc>, window_params = [{pipeline_mode = #tpu.pipeline_mode<synchronous>, transform_indices = @transform_0, window_bounds = array<i64: 1, 128>}, {transform_indices = @transform_1, window_bounds = array<i64: 2, 128, 1152>}, {pipeline_mode = #tpu.pipeline_mode<synchronous>, transform_indices = @transform_2, window_bounds = array<i64: 2, 1, 4608>}, {transform_indices = @transform_3, window_bounds = array<i64: 2, 1, 1152>}]} {
    %c1152_i32 = arith.constant 1152 : i32
    %0 = arith.muli %arg0, %c1152_i32 : i32
    %1 = tpu.assume_multiple %0, 128 : i32
    %c0 = arith.constant 0 : index
    %c0_0 = arith.constant 0 : index
    %2 = vector.load %arg1[%c0, %c0_0] : memref<1x128xf32, #tpu.memory_space<vmem>>, vector<1x128xf32>
    %3 = arith.truncf %2 : vector<1x128xf32> to vector<1x128xbf16>
    %cst = arith.constant 0.000000e+00 : f32
    %4 = vector.broadcast %cst : f32 to vector<1x128xf32>
    %5 = arith.maximumf %2, %4 : vector<1x128xf32>
    %6 = arith.truncf %5 : vector<1x128xf32> to vector<1x128xbf16>
    %c0_1 = arith.constant 0 : index
    %c0_2 = arith.constant 0 : index
    %7 = arith.index_cast %1 : i32 to index
    %8 = vector.load %arg3[%c0_1, %c0_2, %7] : memref<2x1x4608xf32, #tpu.memory_space<vmem>>, vector<1x1x1152xf32>
    %9 = vector.shape_cast %8 : vector<1x1x1152xf32> to vector<1x1152xf32>
    %c1 = arith.constant 1 : index
    %c0_3 = arith.constant 0 : index
    %10 = arith.index_cast %1 : i32 to index
    %11 = vector.load %arg3[%c1, %c0_3, %10] : memref<2x1x4608xf32, #tpu.memory_space<vmem>>, vector<1x1x1152xf32>
    %12 = vector.shape_cast %11 : vector<1x1x1152xf32> to vector<1x1152xf32>
    %c0_4 = arith.constant 0 : index
    %c0_5 = arith.constant 0 : index
    %c0_6 = arith.constant 0 : index
    %13 = vector.load %arg2[%c0_4, %c0_5, %c0_6] : memref<2x128x1152xbf16, #tpu.memory_space<vmem>>, vector<1x128x1152xbf16>
    %14 = vector.shape_cast %13 : vector<1x128x1152xbf16> to vector<128x1152xbf16>
    %cst_7 = arith.constant dense<0.000000e+00> : vector<1x1152xf32>
    %15 = tpu.matmul %3, %14, %cst_7 {dimension_numbers = #tpu.dot_dimension_numbers<[1], [0], [0], [1], [0, 0, 1, 1], [], []>} : vector<1x128xbf16>, vector<128x1152xbf16>, vector<1x1152xf32> -> vector<1x1152xf32>
    %16 = arith.addf %15, %9 : vector<1x1152xf32>
    %c1_8 = arith.constant 1 : index
    %c0_9 = arith.constant 0 : index
    %c0_10 = arith.constant 0 : index
    %17 = vector.load %arg2[%c1_8, %c0_9, %c0_10] : memref<2x128x1152xbf16, #tpu.memory_space<vmem>>, vector<1x128x1152xbf16>
    %18 = vector.shape_cast %17 : vector<1x128x1152xbf16> to vector<128x1152xbf16>
    %cst_11 = arith.constant dense<0.000000e+00> : vector<1x1152xf32>
    %19 = tpu.matmul %6, %18, %cst_11 {dimension_numbers = #tpu.dot_dimension_numbers<[1], [0], [0], [1], [0, 0, 1, 1], [], []>} : vector<1x128xbf16>, vector<128x1152xbf16>, vector<1x1152xf32> -> vector<1x1152xf32>
    %20 = arith.addf %19, %12 : vector<1x1152xf32>
    %cst_12 = arith.constant 0.000000e+00 : f32
    %21 = vector.broadcast %cst_12 : f32 to vector<1x1152xf32>
    %22 = arith.cmpf oge, %16, %21 : vector<1x1152xf32>
    %cst_13 = arith.constant 2.000000e-01 : f32
    %23 = vector.broadcast %cst_13 : f32 to vector<1x1152xf32>
    %24 = arith.mulf %23, %16 : vector<1x1152xf32>
    %25 = arith.select %22, %16, %24 : vector<1x1152xi1>, vector<1x1152xf32>
    %c0_14 = arith.constant 0 : index
    %c0_15 = arith.constant 0 : index
    %c0_16 = arith.constant 0 : index
    %26 = vector.load %arg4[%c0_14, %c0_15, %c0_16] : memref<2x1x1152xf32, #tpu.memory_space<vmem>>, vector<1x1x1152xf32>
    %27 = vector.shape_cast %26 : vector<1x1x1152xf32> to vector<1x1152xf32>
    %28 = vector.shape_cast %25 : vector<1x1152xf32> to vector<1x1x1152xf32>
    tpu.vector_store %arg4[%c0_14, %c0_15, %c0_16], %28 {strides = array<i32>} : memref<2x1x1152xf32, #tpu.memory_space<vmem>>, vector<1x1x1152xf32>,
    %cst_17 = arith.constant 0.000000e+00 : f32
    %29 = vector.broadcast %cst_17 : f32 to vector<1x1152xf32>
    %30 = arith.cmpf oge, %20, %29 : vector<1x1152xf32>
    %cst_18 = arith.constant 2.000000e-01 : f32
    %31 = vector.broadcast %cst_18 : f32 to vector<1x1152xf32>
    %32 = arith.mulf %31, %20 : vector<1x1152xf32>
    %33 = arith.select %30, %20, %32 : vector<1x1152xi1>, vector<1x1152xf32>
    %c1_19 = arith.constant 1 : index
    %c0_20 = arith.constant 0 : index
    %c0_21 = arith.constant 0 : index
    %34 = vector.load %arg4[%c1_19, %c0_20, %c0_21] : memref<2x1x1152xf32, #tpu.memory_space<vmem>>, vector<1x1x1152xf32>
    %35 = vector.shape_cast %34 : vector<1x1x1152xf32> to vector<1x1152xf32>
    %36 = vector.shape_cast %33 : vector<1x1152xf32> to vector<1x1x1152xf32>
    tpu.vector_store %arg4[%c1_19, %c0_20, %c0_21], %36 {strides = array<i32>} : memref<2x1x1152xf32, #tpu.memory_space<vmem>>, vector<1x1x1152xf32>,
    return
  }
  func.func @transform_0(%arg0: i32) -> (i32, i32) {
    %c0_i32 = arith.constant 0 : i32
    %c0_i32_0 = arith.constant 0 : i32
    %c0_i32_1 = arith.constant 0 : i32
    return %c0_i32, %c0_i32_0 : i32, i32
  }
  func.func @transform_1(%arg0: i32) -> (i32, i32, i32) {
    %c0_i32 = arith.constant 0 : i32
    %c0_i32_0 = arith.constant 0 : i32
    %c0_i32_1 = arith.constant 0 : i32
    return %c0_i32, %c0_i32_0, %arg0 : i32, i32, i32
  }
  func.func @transform_2(%arg0: i32) -> (i32, i32, i32) {
    %c0_i32 = arith.constant 0 : i32
    %c0_i32_0 = arith.constant 0 : i32
    %c0_i32_1 = arith.constant 0 : i32
    %c0_i32_2 = arith.constant 0 : i32
    return %c0_i32, %c0_i32_0, %c0_i32_1 : i32, i32, i32
  }
  func.func @transform_3(%arg0: i32) -> (i32, i32, i32) {
    %c0_i32 = arith.constant 0 : i32
    %c0_i32_0 = arith.constant 0 : i32
    %c0_i32_1 = arith.constant 0 : i32
    return %c0_i32, %c0_i32_0, %arg0 : i32, i32, i32
  }
}

</mosaic_0001>

<bundles_post_ra>
// kernel: tpu_custom_call.1
= control target key start
LH: loop header
LB: loop body
LE: loop exit
PB: predicated region body
PF: predicated region fallthrough
CT: control target
= control target key end

     0   :  { %8 = vsyncpa [#allocation3], 0  ;;  %s3216_s0 = inlined_call_operand.hbm [shape: f32[1,128], index: 0, kind: input, shape index: {}]   ;;  %s3217_s1 = inlined_call_operand.hbm [shape: bf16[2,128,4608], index: 1, kind: input, shape index: {}]   ;;  %s3218_s2 = inlined_call_operand.hbm [shape: f32[2,1,4608], index: 2, kind: input, shape index: {}]   ;;  %s3219_s3 = inlined_call_operand.hbm [shape: f32[2,1,4608], index: 3, kind: output, shape index: {}]  }
   0x1   :  { %9 = vsyncpa [#allocation6], 0 }
   0x2   :  { %11 = vsyncpa [#allocation6 + $0x1], 0 }
   0x3   :  { %12 = vsyncpa [#allocation4], 0 }
   0x4   :  { %14 = vsyncpa [#allocation4 + $0x1], 0  ;;  %s2732_s12 = smov 0   ;;  %s2734_s13 = smov 0  }
   0x5   :  { %s2736_s14 = smov 0   ;;  %s2738_s15 = smov 0  }
   0x6 LB: > { %s2753_s16 = sadd.s32 4294967295, %s2696_s15   ;;  %s1954_s17 = sadd.s32 4294967294, %s2696_s15   ;;  %s2696_s15 = sphi %s2738_s15, %s3244_s15   ;;  %s2692_s14 = sphi %s2736_s14, %s3243_s14   ;;  %s2688_s13 = sphi %s2734_s13, %s3242_s13   ;;  %s2684_s12 = sphi %s2732_s12, %s3241_s12  }
   0x7   : > { %s2757_s18 = sadd.s32 1, %s2696_s15   ;;  %s48_s19 = sadd.s32 1, %s2692_s14 }
   0x8   : > { %s45_s20 = ssub.s32 %s2696_s15, %s2757_s18  ;;  %p55_p0 = scmp.ne.s32.totalorder %s2692_s14, %s2688_s13 }
   0x9   : > { %p46_p1 = scmp.eq.s32.totalorder %s45_s20, 0  ;;  %p56_p2 = scmp.eq.s32.totalorder %s2696_s15, 0 }
   0xa   : > { %p61_p3 = scmp.ne.s32.totalorder %s2688_s13, %s2684_s12  ;;  %p3221_p4 = scmp.eq.s32.totalorder %s2753_s16, 0 }
   0xb   : > { %s2769_s21 = scalar_select %p46_p1, %s2692_s14, %s48_s19  }
   0xc   : > { %p2771_p5 = por %p56_p2, %p55_p0  ;;  %p2777_p6 = por %p3221_p4, %p61_p3 }
   0xd   : > { %p106_p7 = scmp.eq.s32.totalorder %s2753_s16, 3  ;;  %p112_p8 = scmp.eq.s32.totalorder %s1954_s17, 3 }
   0xe   : > { %s3225_s23 = scalar_select %p2777_p6, 1, 0 }
   0xf   : > { %p1955_p9 = scmp.ge.s32.totalorder %s2696_s15, 1  ;;  %p119_p10 = scmp.lt.s32.totalorder %s2696_s15, 5 }
  0x10   : > { %p2784_p11 = por %p106_p7, %p55_p0  ;;  %p2788_p12 = por %p112_p8, %p61_p3 }
  0x11   : > { %p2792_p13 = pnand %p1955_p9, %p119_p10  ;;  %s2698_s27 = smov [#allocation7]  }
  0x12   : > { %s3226_s24 = scalar_select %p2784_p11, 1, 0 }
  0x13   : > { %s3227_s25 = scalar_select %p2788_p12, 1, 0 }
  0x14   : > { %s3228_s26 = scalar_select %p2792_p13, 1, 0 }
  0x15   : > { %p2271_p1 = pneg %p2792_p13  ;;  %s142_s28 = sshll.u32 %s2698_s27, 4  ;;  %s143_s28 = int_to_ptr.vmem [resolvable:$true] %s142_s28 }
  0x16   : > { %p2288_p0 = scmp.lt.s32.totalorder %s2696_s15, 4  ;;  %s2699_s30 = smov [#allocation2]  }
  0x17   : > { %p2800_p2 = pnand %p2271_p1, %p3221_p4  ;;  %s132_s4 = sshll.u32 %s2699_s30, 4  ;;  %s133_s4 = int_to_ptr.vmem [resolvable:$true] %s132_s4 }
  0x18   : > { %s2555_s5 = scalar_lea.vmem %s143_s28, 1152  ;;  %p2563_p10 = scmp.lt.s32.totalorder %s143_s28, %s143_s28 }
  0x19   : > { %p2546_p3 = pneg %p2800_p2  ;;  %p2556_p7 = scmp.ne.s32.totalorder %s143_s28, %s2555_s5 }
  0x1a   : > { %p2564_p12 = scmp.lt.s32.totalorder %s2555_s5, %s2555_s5 }
  0x1b   : > { %p2558_p8 = pnand %p2556_p7, %p2546_p3 }
  0x1c   : > { %p2565_p11 = por %p2564_p12, %p2563_p10 }
  0x1d   : > { %p2559_p9 = pneg %p2558_p8 }
  0x1f   : > { %p2566_p1 = pnand %p2565_p11, %p2559_p9 }
  0x21   : > { %2569 = shalt.err (!%p2566_p1)
}
  0x22   : > { %s2700_s6 = smov 576   ;;  %s2701_s7 = smov 36  }
  0x23   : > { %2277 = dma.hbm_to_vmem [thread:$0]  (!%p2800_p2), %s3218_s2, 1152, %s143_s28, [#allocation6], %s2700_s6, %s2700_s6, %s2701_s7  }
  0x24   : > { %p2822_p7 = pnand %p2288_p0, %p2771_p5  ;;  %s2581_s11 = scalar_lea.vmem %s133_s4, 16 }
  0x25   : > { %p2582_p11 = scmp.ne.s32.totalorder %s133_s4, %s2581_s11  ;;  %s2588_s17 = scalar_lea.vmem %s133_s4, 32 }
  0x26   : > { %p2589_p9 = scmp.lt.s32.totalorder %s133_s4, %s133_s4  ;;  %p2590_p10 = scmp.lt.s32.totalorder %s2588_s17, %s2581_s11 }
  0x27   : > { %p2584_p12 = pnand %p2582_p11, %p2546_p3 }
  0x28   : > { %p2591_p1 = por %p2590_p10, %p2589_p9 }
  0x29   : > { %p2585_p8 = pneg %p2584_p12 }
  0x2b   : > { %p2592_p4 = pnand %p2591_p1, %p2585_p8 }
  0x2d   : > { %2595 = shalt.err (!%p2592_p4)
}
  0x2e   : > { %2274 = dma.hbm_to_vmem [thread:$0]  (!%p2800_p2), %s3216_s0, 16, %s133_s4, [#allocation3]  }
  0x2f   : > { %s156_s22 = sand.u32 1, %s2696_s15   ;;  %s158_s27 = sand.u32 1, %s2692_s14  }
  0x30   : > { %s2256_s28 = smul.u32 1152, %s158_s27  ;;  %s2844_s17 = scalar_lea.sflag [#allocation6], %s156_s22 }
  0x31   : > { %s2196_s30 = smul.u32 576, %s2696_s15  ;;  %p2598_p5 = pneg %p2822_p7 }
  0x32   : > { %s160_s29 = scalar_lea.vmem [#allocation5], %s2256_s28  ;;  %s2601_s27 = scalar_lea.hbm %s3217_s1, 73728 }
  0x33   : > { %s2840_s9 = scalar_lea.hbm %s3217_s1, %s2196_s30  ;;  %s167_s11 = sshll.u32 %s160_s29, 4  ;;  %s2842_s11 = int_to_ptr.vmem [resolvable:$true] %s167_s11 }
  0x34   : > { %s2596_s19 = scalar_lea.hbm %s2840_s9, 18432  ;;  %p2602_p3 = scmp.lt.s32.totalorder %s2840_s9, %s3217_s1 }
  0x35   : > { %p2597_p4 = scmp.ne.s32.totalorder %s2840_s9, %s2596_s19  ;;  %p2603_p11 = scmp.lt.s32.totalorder %s2601_s27, %s2596_s19 }
  0x37   : > { %p2599_p2 = pnand %p2598_p5, %p2597_p4  ;;  %p2604_p12 = por %p2603_p11, %p2602_p3 }
  0x39   : > { %p2600_p0 = pneg %p2599_p2 }
  0x3b   : > { %p2605_p8 = pnand %p2604_p12, %p2600_p0 }
  0x3d   : > { %2608 = shalt.err (!%p2605_p8)
}
  0x3e   : > { %s2609_s22 = scalar_lea.vmem %s2842_s11, 18432  ;;  %s2702_s28 = smov [#allocation5]  }
  0x3f   : > { %p2610_p9 = scmp.ne.s32.totalorder %s2842_s11, %s2609_s22  ;;  %s2614_s8 = sshll.u32 %s2702_s28, 4  ;;  %s2615_s8 = int_to_ptr.vmem [resolvable:$false] %s2614_s8 }
  0x40   : > { %s2616_s29 = scalar_lea.vmem %s2615_s8, 36864  ;;  %p2617_p4 = scmp.lt.s32.totalorder %s2842_s11, %s2615_s8 }
  0x41   : > { %p2612_p10 = pnand %p2610_p9, %p2598_p5  ;;  %p2618_p2 = scmp.lt.s32.totalorder %s2616_s29, %s2609_s22 }
  0x43   : > { %p2613_p1 = pneg %p2612_p10  ;;  %p2619_p6 = por %p2618_p2, %p2617_p4 }
  0x45   : > { %p2620_p13 = pnand %p2619_p6, %p2613_p1 }
  0x47   : > { %2623 = shalt.err (!%p2620_p13)
}
  0x48   : > { %s2703_s19 = smov 2304   ;;  %p3231_p5 = scmp.ne.s32.totalorder %s3228_s26, 0 }
  0x49   : > { %2281 = dma.hbm_to_vmem [thread:$0]  (!%p2822_p7), %s2840_s9, 18432, %s2842_s11, %s2844_s17, %s2703_s19, %s2700_s6, %s2701_s7  }
  0x4a   : > { %179 = sbr.rel (%p3231_p5) target bundleno = 475 (0x1db), region = 32  ;;  %p3232_p0 = scmp.eq.s32.totalorder (!%p3231_p5), %s2753_s16, 0 }
  0x4f   : > { %2667 = dma.done.wait (%p3232_p0), [#allocation3], 16   ;;  %p3233_p3 = pmov %p3232_p0 }
  0x50   : > { %s185_s4 = sand.u32 1, %s2753_s16   ;;  %s2875_s10 = sand.u32 1, %s2688_s13  }
  0x51   : > { %2669 = vsyncadd (%p3233_p3), [#allocation3], 4294967280  ;;  %s2257_s20 = smul.u32 1152, %s2875_s10  ;;  %s186_s27 = scalar_lea.sflag [#allocation6], %s185_s4 }
  0x52   : > { %p3234_p6 = scmp.ne.s32.totalorder %s3225_s23, 0 }
  0x53   : > { %s2878_s30 = scalar_lea.vmem [#allocation5], %s2257_s20 }
  0x54   : > { %2671 = dma.done.wait (%p3234_p6), %s186_s27, 18432  }
  0x55   : > { %2673 = vsyncadd (%p3234_p6), %s186_s27, 4294948864  ;;  %p3235_p13 = pmov %p3232_p0 }
  0x56   : > { %p3236_p7 = pmov %p3232_p0 }
  0x57   : > { %2675 = dma.done.wait (%p3235_p13), [#allocation6], 1152  }
  0x58   : > { %2677 = vsyncadd (%p3236_p7), [#allocation6], 4294966144  ;;  %v2704_v0 = vmov 0   ;;  %v2336_v1 = vld [vmem:[%s2878_s30 + $0x1fc] ss:$36 sps:$4 sm:$0xff]   ;;  %vm2706_vm0 = vmmov 0  }
  0x59   : > { %760 = vmatprep.mubr.bf16.mxu0 %v2704_v0  ;;  %801 = vmatprep.mubr.bf16.mxu1 %v2704_v0  ;;  %v2338_v2 = vld [vmem:[%s2878_s30 + $0x204] ss:$36 sps:$4 sm:$0xff]   ;;  %v2340_v3 = vld [vmem:[%s2878_s30 + $0x1f8] ss:$36 sps:$4 sm:$0xff]   ;;  %v2346_v7 = vld [vmem:[%s2878_s30 + $0x1b0] ss:$36 sps:$4 sm:$0xff]  }
  0x5a   : > { %728 = vmatprep.subr.bf16.mxu0 %v2336_v1  ;;  %v2341_v4 = vld [vmem:[%s2878_s30 + $0x200] ss:$36 sps:$4 sm:$0xff]   ;;  %769 = vmatprep.subr.bf16.mxu1 %v2338_v2  ;;  %v2342_v5 = vld [vmem:[%s2878_s30 + $0x1b4] ss:$36 sps:$4 sm:$0xff]   ;;  %v2348_v9 = vld [vmem:[%s2878_s30 + $0x16c] ss:$36 sps:$4 sm:$0xff]  }
  0x5b   : > { %729 = vmatpush1.bf16.msra.mxu0 %v2340_v3  ;;  %770 = vmatpush1.bf16.msra.mxu1 %v2341_v4  ;;  %v2344_v6 = vld [vmem:[%s2878_s30 + $0x1bc] ss:$36 sps:$4 sm:$0xff]   ;;  %v2350_v10 = vld [vmem:[%s2878_s30 + $0x174] ss:$36 sps:$4 sm:$0xff]   ;;  %v2352_v11 = vld [vmem:[%s2878_s30 + $0x168] ss:$36 sps:$4 sm:$0xff]  }
  0x5c   : > { %730 = vmatprep.subr.bf16.mxu0 %v2342_v5  ;;  %v2347_v8 = vld [vmem:[%s2878_s30 + $0x1b8] ss:$36 sps:$4 sm:$0xff]   ;;  %771 = vmatprep.subr.bf16.mxu1 %v2344_v6  ;;  %v2353_v12 = vld [vmem:[%s2878_s30 + $0x170] ss:$36 sps:$4 sm:$0xff]   ;;  %v2354_v13 = vld [vmem:[%s2878_s30 + $0x124] ss:$36 sps:$4 sm:$0xff]  }
  0x5d   : > { %v2356_v14 = vld [vmem:[%s2878_s30 + $0x12c] ss:$36 sps:$4 sm:$0xff]   ;;  %v2358_v15 = vld [vmem:[%s2878_s30 + $0x120] ss:$36 sps:$4 sm:$0xff]   ;;  %v2364_v19 = vld [vmem:[%s2878_s30 + $0xd8] ss:$36 sps:$4 sm:$0xff]  }
  0x5e   : > { %v2359_v16 = vld [vmem:[%s2878_s30 + $0x128] ss:$36 sps:$4 sm:$0xff]   ;;  %v2360_v17 = vld [vmem:[%s2878_s30 + $0xdc] ss:$36 sps:$4 sm:$0xff]   ;;  %v2366_v21 = vld [vmem:[%s2878_s30 + $0x94] ss:$36 sps:$4 sm:$0xff]  }
  0x5f   : > { %731 = vmatpush1.bf16.msra.mxu0 %v2346_v7  ;;  %772 = vmatpush1.bf16.msra.mxu1 %v2347_v8  ;;  %v2362_v18 = vld [vmem:[%s2878_s30 + $0xe4] ss:$36 sps:$4 sm:$0xff]   ;;  %v2368_v22 = vld [vmem:[%s2878_s30 + $0x9c] ss:$36 sps:$4 sm:$0xff]   ;;  %v2370_v23 = vld [vmem:[%s2878_s30 + $0x90] ss:$36 sps:$4 sm:$0xff]  }
  0x60   : > { %732 = vmatprep.subr.bf16.mxu0 %v2348_v9  ;;  %773 = vmatprep.subr.bf16.mxu1 %v2350_v10  ;;  %v2365_v20 = vld [vmem:[%s2878_s30 + $0xe0] ss:$36 sps:$4 sm:$0xff]   ;;  %v2371_v24 = vld [vmem:[%s2878_s30 + $0x98] ss:$36 sps:$4 sm:$0xff]   ;;  %v2372_v25 = vld [vmem:[%s2878_s30 + $0x4c] ss:$36 sps:$4 sm:$0xff]  }
  0x61   : > { %v2374_v26 = vld [vmem:[%s2878_s30 + $0x54] ss:$36 sps:$4 sm:$0xff]   ;;  %v2376_v27 = vld [vmem:[%s2878_s30 + $0x48] ss:$36 sps:$4 sm:$0xff]   ;;  %v2382_v31 = vld [vmem:[%s2878_s30] ss:$36 sps:$4 sm:$0xff]  }
  0x62   : > { %v2377_v28 = vld [vmem:[%s2878_s30 + $0x50] ss:$36 sps:$4 sm:$0xff]   ;;  %v2378_v29 = vld [vmem:[%s2878_s30 + $0x4] ss:$36 sps:$4 sm:$0xff]   ;;  %v2922_v33 = vld [vmem:[#allocation2] sm:$0x1] }
  0x63   : > { %733 = vmatpush1.bf16.msra.mxu0 %v2352_v11  ;;  %774 = vmatpush1.bf16.msra.mxu1 %v2353_v12  ;;  %v2380_v30 = vld [vmem:[%s2878_s30 + $0xc] ss:$36 sps:$4 sm:$0xff]   ;;  %v2389_v35 = vld [vmem:[%s2878_s30 + $0x214] ss:$36 sps:$4 sm:$0xff]   ;;  %v2928_v36 = vpack.c.bf16 %v2922_v33, %v2922_v33  ;;  %v2392_v39 = vld [vmem:[%s2878_s30 + $0x1c4] ss:$36 sps:$4 sm:$0xff]  }
  0x64   : > { %734 = vmatprep.subr.bf16.mxu0 %v2354_v13  ;;  %775 = vmatprep.subr.bf16.mxu1 %v2356_v14  ;;  %v2383_v32 = vld [vmem:[%s2878_s30 + $0x8] ss:$36 sps:$4 sm:$0xff]   ;;  %v2387_v38 = vld [vmem:[%s2878_s30 + $0x210] ss:$36 sps:$4 sm:$0xff]   ;;  %v2390_v41 = vld [vmem:[%s2878_s30 + $0x1c0] ss:$36 sps:$4 sm:$0xff]  }
  0x65   : > { %v2386_v34 = vld [vmem:[%s2878_s30 + $0x20c] ss:$36 sps:$4 sm:$0xff]   ;;  %v2398_v43 = vld [vmem:[%s2878_s30 + $0x17c] ss:$36 sps:$4 sm:$0xff]   ;;  %v2401_v44 = vld [vmem:[%s2878_s30 + $0x184] ss:$36 sps:$4 sm:$0xff]  }
  0x66   : > { %v2384_v37 = vld [vmem:[%s2878_s30 + $0x208] ss:$36 sps:$4 sm:$0xff]   ;;  %v2396_v45 = vld [vmem:[%s2878_s30 + $0x178] ss:$36 sps:$4 sm:$0xff]   ;;  %v2399_v46 = vld [vmem:[%s2878_s30 + $0x180] ss:$36 sps:$4 sm:$0xff]  }
  0x67   : > { %735 = vmatpush1.bf16.msra.mxu0 %v2358_v15  ;;  %776 = vmatpush1.bf16.msra.mxu1 %v2359_v16  ;;  %v2395_v40 = vld [vmem:[%s2878_s30 + $0x1cc] ss:$36 sps:$4 sm:$0xff]   ;;  %v2404_v47 = vld [vmem:[%s2878_s30 + $0x134] ss:$36 sps:$4 sm:$0xff]   ;;  %v2407_v48 = vld [vmem:[%s2878_s30 + $0x13c] ss:$36 sps:$4 sm:$0xff]  }
  0x68   : > { %736 = vmatprep.subr.bf16.mxu0 %v2360_v17  ;;  %777 = vmatprep.subr.bf16.mxu1 %v2362_v18  ;;  %v2393_v42 = vld [vmem:[%s2878_s30 + $0x1c8] ss:$36 sps:$4 sm:$0xff]   ;;  %v2402_v49 = vld [vmem:[%s2878_s30 + $0x130] ss:$36 sps:$4 sm:$0xff]   ;;  %v2405_v50 = vld [vmem:[%s2878_s30 + $0x138] ss:$36 sps:$4 sm:$0xff]  }
  0x69   : > { %v2410_v51 = vld [vmem:[%s2878_s30 + $0xec] ss:$36 sps:$4 sm:$0xff]   ;;  %v2413_v52 = vld [vmem:[%s2878_s30 + $0xf4] ss:$36 sps:$4 sm:$0xff]   ;;  %v2416_v55 = vld [vmem:[%s2878_s30 + $0xa4] ss:$36 sps:$4 sm:$0xff]  }
  0x6a   : > { %v2408_v53 = vld [vmem:[%s2878_s30 + $0xe8] ss:$36 sps:$4 sm:$0xff]   ;;  %v2411_v54 = vld [vmem:[%s2878_s30 + $0xf0] ss:$36 sps:$4 sm:$0xff]   ;;  %v2414_v57 = vld [vmem:[%s2878_s30 + $0xa0] ss:$36 sps:$4 sm:$0xff]  }
  0x6b   : > { %737 = vmatpush1.bf16.msra.mxu0 %v2364_v19  ;;  %778 = vmatpush1.bf16.msra.mxu1 %v2365_v20  ;;  %v2419_v56 = vld [vmem:[%s2878_s30 + $0xac] ss:$36 sps:$4 sm:$0xff]   ;;  %v2422_v59 = vld [vmem:[%s2878_s30 + $0x5c] ss:$36 sps:$4 sm:$0xff]   ;;  %v2425_v60 = vld [vmem:[%s2878_s30 + $0x64] ss:$36 sps:$4 sm:$0xff]  }
  0x6c   : > { %738 = vmatprep.subr.bf16.mxu0 %v2366_v21  ;;  %779 = vmatprep.subr.bf16.mxu1 %v2368_v22  ;;  %v2417_v58 = vld [vmem:[%s2878_s30 + $0xa8] ss:$36 sps:$4 sm:$0xff]   ;;  %v2420_v61 = vld [vmem:[%s2878_s30 + $0x58] ss:$36 sps:$4 sm:$0xff]   ;;  %v2423_v62 = vld [vmem:[%s2878_s30 + $0x60] ss:$36 sps:$4 sm:$0xff]  }
  0x6d   : > { %v2428_v63 = vld [vmem:[%s2878_s30 + $0x14] ss:$36 sps:$4 sm:$0xff]   ;;  %v2431_v1 = vld [vmem:[%s2878_s30 + $0x1c] ss:$36 sps:$4 sm:$0xff]   ;;  %v2705_v7 = vmov 0.0   ;;  %s219_s23 = smul.u32 1152, %s2753_s16 }
  0x6e   : > { %v2426_v2 = vld [vmem:[%s2878_s30 + $0x10] ss:$36 sps:$4 sm:$0xff]   ;;  %v2429_v3 = vld [vmem:[%s2878_s30 + $0x18] ss:$36 sps:$4 sm:$0xff]   ;;  %v2440_v12 = vld [vmem:[%s2878_s30 + $0x188] ss:$36 sps:$4 sm:$0xff]  }
  0x6f   : > { %739 = vmatpush1.bf16.msra.mxu0 %v2370_v23  ;;  %780 = vmatpush1.bf16.msra.mxu1 %v2371_v24  ;;  %v2435_v4 = vld [vmem:[%s2878_s30 + $0x43c] ss:$36 sps:$4 sm:$0xff]   ;;  %v2439_v8 = vld [vmem:[%s2878_s30 + $0x3f4] ss:$36 sps:$4 sm:$0xff]   ;;  %v2443_v11 = vld [vmem:[%s2878_s30 + $0x3ac] ss:$36 sps:$4 sm:$0xff]  }
  0x70   : > { %740 = vmatprep.subr.bf16.mxu0 %v2372_v25  ;;  %781 = vmatprep.subr.bf16.mxu1 %v2374_v26  ;;  %v2432_v5 = vld [vmem:[%s2878_s30 + $0x218] ss:$36 sps:$4 sm:$0xff]   ;;  %v2436_v9 = vld [vmem:[%s2878_s30 + $0x1d0] ss:$36 sps:$4 sm:$0xff]   ;;  %v2441_v13 = vld [vmem:[%s2878_s30 + $0x3a8] ss:$36 sps:$4 sm:$0xff]  }
  0x71   : > { %v2433_v6 = vld [vmem:[%s2878_s30 + $0x438] ss:$36 sps:$4 sm:$0xff]   ;;  %v2437_v10 = vld [vmem:[%s2878_s30 + $0x3f0] ss:$36 sps:$4 sm:$0xff]   ;;  %v2447_v14 = vld [vmem:[%s2878_s30 + $0x364] ss:$36 sps:$4 sm:$0xff]  }
  0x72   : > { %v2444_v15 = vld [vmem:[%s2878_s30 + $0x140] ss:$36 sps:$4 sm:$0xff]   ;;  %v2448_v18 = vld [vmem:[%s2878_s30 + $0xf8] ss:$36 sps:$4 sm:$0xff]   ;;  %v2452_v21 = vld [vmem:[%s2878_s30 + $0xb0] ss:$36 sps:$4 sm:$0xff]  }
  0x73   : > { %741 = vmatpush1.bf16.msra.mxu0 %v2376_v27  ;;  %782 = vmatpush1.bf16.msra.mxu1 %v2377_v28  ;;  %v2445_v16 = vld [vmem:[%s2878_s30 + $0x360] ss:$36 sps:$4 sm:$0xff]   ;;  %v2449_v19 = vld [vmem:[%s2878_s30 + $0x318] ss:$36 sps:$4 sm:$0xff]   ;;  %v2453_v22 = vld [vmem:[%s2878_s30 + $0x2d0] ss:$36 sps:$4 sm:$0xff]  }
  0x74   : > { %742 = vmatprep.subr.bf16.mxu0 %v2378_v29  ;;  %783 = vmatprep.subr.bf16.mxu1 %v2380_v30  ;;  %v2451_v17 = vld [vmem:[%s2878_s30 + $0x31c] ss:$36 sps:$4 sm:$0xff]   ;;  %v2455_v20 = vld [vmem:[%s2878_s30 + $0x2d4] ss:$36 sps:$4 sm:$0xff]   ;;  %v2459_v23 = vld [vmem:[%s2878_s30 + $0x28c] ss:$36 sps:$4 sm:$0xff]  }
  0x75   : > { %v2456_v24 = vld [vmem:[%s2878_s30 + $0x68] ss:$36 sps:$4 sm:$0xff]   ;;  %v222_v27 = vmax.f32 %v2922_v33, 0.0  ;;  %v2460_v28 = vld [vmem:[%s2878_s30 + $0x20] ss:$36 sps:$4 sm:$0xff]   ;;  %s224_s26 = sshra.s32 %s219_s23, 7 }
  0x76   : > { %v2457_v25 = vld [vmem:[%s2878_s30 + $0x288] ss:$36 sps:$4 sm:$0xff]   ;;  %v2461_v29 = vld [vmem:[%s2878_s30 + $0x240] ss:$36 sps:$4 sm:$0xff]   ;;  %s3087_s6 = scalar_lea.vmem [#allocation7], %s224_s26  ;;  %s2258_s7 = smul.u32 18, %s2875_s10 }
  0x77   : > { %743 = vmatpush1.bf16.msra.mxu0 %v2382_v31  ;;  %784 = vmatpush1.bf16.msra.mxu1 %v2383_v32  ;;  %v2463_v26 = vld [vmem:[%s2878_s30 + $0x244] ss:$36 sps:$4 sm:$0xff]   ;;  %v2469_v31 = vld [vmem:[%s2878_s30 + $0x44c] ss:$36 sps:$4 sm:$0xff]   ;;  %v2472_v33 = vld [vmem:[%s2878_s30 + $0x3fc] ss:$36 sps:$4 sm:$0xff]  }
  0x78   : > { %810 = vmatprep.subr.bf16.mxu0 %v2386_v34  ;;  %851 = vmatprep.subr.bf16.mxu1 %v2389_v35  ;;  %v2466_v30 = vld [vmem:[%s2878_s30 + $0x444] ss:$36 sps:$4 sm:$0xff]   ;;  %v3006_v35 = vpack.c.bf16 %v222_v27, %v222_v27  ;;  %s3120_s9 = scalar_lea.vmem [#allocation8], %s2258_s7  ;;  %s2197_s11 = smul.u32 144, %s2753_s16 }
  0x79   : > { %v2464_v32 = vld [vmem:[%s2878_s30 + $0x440] ss:$36 sps:$4 sm:$0xff]   ;;  %v2467_v34 = vld [vmem:[%s2878_s30 + $0x448] ss:$36 sps:$4 sm:$0xff]   ;;  %s1857_s17 = sshll.u32 %s3120_s9, 4  ;;  %s1844_s16 = scalar_lea.sflag [#allocation4], %s2875_s10  ;;  %s3173_s17 = int_to_ptr.vmem [resolvable:$true] %s1857_s17 }
  0x7a   : > { %761 = vmatmul.mubr.bf16.vlgmr.msra.gmra.mxu0 %v2928_v36  ;;  %802 = vmatmul.mubr.bf16.vlgmr.msra.gmra.mxu1 %v2928_v36  ;;  %s3171_s28 = scalar_lea.hbm %s3219_s3, %s2197_s11  ;;  %s2624_s8 = scalar_lea.vmem %s3173_s17, 288 }
  0x7b   : > { %811 = vmatpush1.bf16.msra.mxu0 %v2384_v37  ;;  %852 = vmatpush1.bf16.msra.mxu1 %v2387_v38  ;;  %v2475_v37 = vld [vmem:[%s2878_s30 + $0x404] ss:$36 sps:$4 sm:$0xff]   ;;  %v2470_v38 = vld [vmem:[%s2878_s30 + $0x3f8] ss:$36 sps:$4 sm:$0xff]   ;;  %p2625_p11 = scmp.ne.s32.totalorder %s3173_s17, %s2624_s8  ;;  %p3239_p12 = scmp.ne.s32.totalorder %s3226_s24, 0 }
  0x7c   : > { %812 = vmatprep.subr.bf16.mxu0 %v2392_v39  ;;  %853 = vmatprep.subr.bf16.mxu1 %v2395_v40  ;;  %v2473_v39 = vld [vmem:[%s2878_s30 + $0x400] ss:$36 sps:$4 sm:$0xff]   ;;  %v2478_v40 = vld [vmem:[%s2878_s30 + $0x3b4] ss:$36 sps:$4 sm:$0xff]   ;;  %s2708_s29 = smov [#allocation8]  }
  0x7d   : > { %842 = vmatprep.mubr.bf16.mxu0 %v2704_v0  ;;  %883 = vmatprep.mubr.bf16.mxu1 %v2704_v0  ;;  %p2626_p8 = pnand %p2625_p11, %p3239_p12  ;;  %s2628_s19 = sshll.u32 %s2708_s29, 4  ;;  %s2629_s19 = int_to_ptr.vmem [resolvable:$false] %s2628_s19 }
  0x7e   : > { %s2630_s4 = scalar_lea.vmem %s2629_s19, 576  ;;  %p2631_p10 = scmp.lt.s32.totalorder %s3173_s17, %s2629_s19 }
  0x7f   : > { %813 = vmatpush1.bf16.msra.mxu0 %v2390_v41  ;;  %854 = vmatpush1.bf16.msra.mxu1 %v2393_v42  ;;  %v2481_v41 = vld [vmem:[%s2878_s30 + $0x3bc] ss:$36 sps:$4 sm:$0xff]   ;;  %p2627_p9 = pneg %p2626_p8  ;;  %p2632_p1 = scmp.lt.s32.totalorder %s2630_s4, %s2624_s8 }
  0x80   : > { %814 = vmatprep.subr.bf16.mxu0 %v2398_v43  ;;  %855 = vmatprep.subr.bf16.mxu1 %v2401_v44  ;;  %v2479_v42 = vld [vmem:[%s2878_s30 + $0x3b8] ss:$36 sps:$4 sm:$0xff]   ;;  %v2484_v43 = vld [vmem:[%s2878_s30 + $0x36c] ss:$36 sps:$4 sm:$0xff]  }
  0x81   : > { %v2487_v44 = vld [vmem:[%s2878_s30 + $0x374] ss:$36 sps:$4 sm:$0xff]   ;;  %p2633_p4 = por %p2632_p1, %p2631_p10 }
  0x83   : > { %815 = vmatpush1.bf16.msra.mxu0 %v2396_v45  ;;  %856 = vmatpush1.bf16.msra.mxu1 %v2399_v46  ;;  %v2482_v45 = vld [vmem:[%s2878_s30 + $0x368] ss:$36 sps:$4 sm:$0xff]   ;;  %v2485_v46 = vld [vmem:[%s2878_s30 + $0x370] ss:$36 sps:$4 sm:$0xff]   ;;  %p2634_p2 = pnand %p2633_p4, %p2627_p9 }
  0x84   : > { %816 = vmatprep.subr.bf16.mxu0 %v2404_v47  ;;  %857 = vmatprep.subr.bf16.mxu1 %v2407_v48  ;;  %v2490_v47 = vld [vmem:[%s2878_s30 + $0x324] ss:$36 sps:$4 sm:$0xff]   ;;  %v2493_v48 = vld [vmem:[%s2878_s30 + $0x32c] ss:$36 sps:$4 sm:$0xff]  }
  0x87   : > { %817 = vmatpush1.bf16.msra.mxu0 %v2402_v49  ;;  %858 = vmatpush1.bf16.msra.mxu1 %v2405_v50  ;;  %v2488_v49 = vld [vmem:[%s2878_s30 + $0x320] ss:$36 sps:$4 sm:$0xff]   ;;  %v2491_v50 = vld [vmem:[%s2878_s30 + $0x328] ss:$36 sps:$4 sm:$0xff]  }
  0x88   : > { %818 = vmatprep.subr.bf16.mxu0 %v2410_v51  ;;  %859 = vmatprep.subr.bf16.mxu1 %v2413_v52  ;;  %v2496_v51 = vld [vmem:[%s2878_s30 + $0x2dc] ss:$36 sps:$4 sm:$0xff]   ;;  %v2499_v52 = vld [vmem:[%s2878_s30 + $0x2e4] ss:$36 sps:$4 sm:$0xff]  }
  0x8b   : > { %819 = vmatpush1.bf16.msra.mxu0 %v2408_v53  ;;  %860 = vmatpush1.bf16.msra.mxu1 %v2411_v54  ;;  %v2494_v53 = vld [vmem:[%s2878_s30 + $0x2d8] ss:$36 sps:$4 sm:$0xff]   ;;  %v2497_v54 = vld [vmem:[%s2878_s30 + $0x2e0] ss:$36 sps:$4 sm:$0xff]  }
  0x8c   : > { %820 = vmatprep.subr.bf16.mxu0 %v2416_v55  ;;  %861 = vmatprep.subr.bf16.mxu1 %v2419_v56  ;;  %v2502_v55 = vld [vmem:[%s2878_s30 + $0x294] ss:$36 sps:$4 sm:$0xff]   ;;  %v2505_v56 = vld [vmem:[%s2878_s30 + $0x29c] ss:$36 sps:$4 sm:$0xff]  }
  0x8f   : > { %821 = vmatpush1.bf16.msra.mxu0 %v2414_v57  ;;  %862 = vmatpush1.bf16.msra.mxu1 %v2417_v58  ;;  %v2500_v57 = vld [vmem:[%s2878_s30 + $0x290] ss:$36 sps:$4 sm:$0xff]   ;;  %v2503_v58 = vld [vmem:[%s2878_s30 + $0x298] ss:$36 sps:$4 sm:$0xff]  }
  0x90   : > { %822 = vmatprep.subr.bf16.mxu0 %v2422_v59  ;;  %863 = vmatprep.subr.bf16.mxu1 %v2425_v60  ;;  %v2508_v59 = vld [vmem:[%s2878_s30 + $0x24c] ss:$36 sps:$4 sm:$0xff]   ;;  %v2511_v60 = vld [vmem:[%s2878_s30 + $0x254] ss:$36 sps:$4 sm:$0xff]  }
  0x93   : > { %823 = vmatpush1.bf16.msra.mxu0 %v2420_v61  ;;  %864 = vmatpush1.bf16.msra.mxu1 %v2423_v62  ;;  %v2506_v61 = vld [vmem:[%s2878_s30 + $0x248] ss:$36 sps:$4 sm:$0xff]   ;;  %v2509_v62 = vld [vmem:[%s2878_s30 + $0x250] ss:$36 sps:$4 sm:$0xff]  }
  0x94   : > { %824 = vmatprep.subr.bf16.mxu0 %v2428_v63  ;;  %865 = vmatprep.subr.bf16.mxu1 %v2431_v1  ;;  %v2514_v63 = vld [vmem:[%s2878_s30 + $0x454] ss:$36 sps:$4 sm:$0xff]  }
  0x95   : > { %v2512_v1 = vld [vmem:[%s2878_s30 + $0x450] ss:$36 sps:$4 sm:$0xff]  }
  0x97   : > { %825 = vmatpush1.bf16.msra.mxu0 %v2426_v2  ;;  %866 = vmatpush1.bf16.msra.mxu1 %v2429_v3  ;;  %v2515_v2 = vld [vmem:[%s2878_s30 + $0x458] ss:$36 sps:$4 sm:$0xff]   ;;  %v2518_v3 = vld [vmem:[%s2878_s30 + $0x40c] ss:$36 sps:$4 sm:$0xff]  }
  0x98   : > { %2216 = vmatprep.subr.bf16.mxu0 %v2705_v7  ;;  %1428 = vmatprep.subr.bf16.mxu1 %v2435_v4  ;;  %v2516_v4 = vld [vmem:[%s2878_s30 + $0x408] ss:$36 sps:$4 sm:$0xff]  }
  0x9a   : > { %843 = vmatmul.mubr.bf16.vlgmr.msra.gmra.mxu0 %v2928_v36  ;;  %884 = vmatmul.mubr.bf16.vlgmr.msra.gmra.mxu1 %v2928_v36 }
  0x9b   : > { %2217 = vmatpush3.bf16.msra.mxu0 %v2432_v5  ;;  %1429 = vmatpush1.bf16.msra.mxu1 %v2433_v6  ;;  %v2519_v5 = vld [vmem:[%s2878_s30 + $0x410] ss:$36 sps:$4 sm:$0xff]   ;;  %v2522_v6 = vld [vmem:[%s2878_s30 + $0x3c4] ss:$36 sps:$4 sm:$0xff]  }
  0x9c   : > { %2218 = vmatprep.subr.bf16.mxu0 %v2705_v7  ;;  %1430 = vmatprep.subr.bf16.mxu1 %v2439_v8  ;;  %v2520_v8 = vld [vmem:[%s2878_s30 + $0x3c0] ss:$36 sps:$4 sm:$0xff]  }
  0x9d   : > { %2232 = vmatprep.mubr.msk.bf16.mxu0 %vm2706_vm0, %v2705_v7  ;;  %1460 = vmatprep.mubr.bf16.mxu1 %v2704_v0 }
  0x9f   : > { %2219 = vmatpush3.bf16.msra.mxu0 %v2436_v9  ;;  %1431 = vmatpush1.bf16.msra.mxu1 %v2437_v10  ;;  %v2523_v9 = vld [vmem:[%s2878_s30 + $0x3c8] ss:$36 sps:$4 sm:$0xff]   ;;  %v2526_v10 = vld [vmem:[%s2878_s30 + $0x37c] ss:$36 sps:$4 sm:$0xff]  }
  0xa0   : > { %2220 = vmatprep.subr.bf16.mxu0 %v2705_v7  ;;  %1432 = vmatprep.subr.bf16.mxu1 %v2443_v11  ;;  %v2524_v11 = vld [vmem:[%s2878_s30 + $0x378] ss:$36 sps:$4 sm:$0xff]  }
  0xa3   : > { %2221 = vmatpush3.bf16.msra.mxu0 %v2440_v12  ;;  %1433 = vmatpush1.bf16.msra.mxu1 %v2441_v13  ;;  %v2530_v12 = vld [vmem:[%s2878_s30 + $0x334] ss:$36 sps:$4 sm:$0xff]  }
  0xa4   : > { %2222 = vmatprep.subr.bf16.mxu0 %v2705_v7  ;;  %1434 = vmatprep.subr.bf16.mxu1 %v2447_v14  ;;  %v2528_v13 = vld [vmem:[%s2878_s30 + $0x330] ss:$36 sps:$4 sm:$0xff]   ;;  %v2531_v14 = vld [vmem:[%s2878_s30 + $0x338] ss:$36 sps:$4 sm:$0xff]  }
  0xa7   : > { %2223 = vmatpush3.bf16.msra.mxu0 %v2444_v15  ;;  %1435 = vmatpush1.bf16.msra.mxu1 %v2445_v16  ;;  %v2534_v15 = vld [vmem:[%s2878_s30 + $0x2ec] ss:$36 sps:$4 sm:$0xff]  }
  0xa8   : > { %2224 = vmatprep.subr.bf16.mxu0 %v2705_v7  ;;  %1436 = vmatprep.subr.bf16.mxu1 %v2451_v17  ;;  %v2532_v16 = vld [vmem:[%s2878_s30 + $0x2e8] ss:$36 sps:$4 sm:$0xff]   ;;  %v2535_v17 = vld [vmem:[%s2878_s30 + $0x2f0] ss:$36 sps:$4 sm:$0xff]  }
  0xab   : > { %2225 = vmatpush3.bf16.msra.mxu0 %v2448_v18  ;;  %1437 = vmatpush1.bf16.msra.mxu1 %v2449_v19  ;;  %v2538_v18 = vld [vmem:[%s2878_s30 + $0x2a4] ss:$36 sps:$4 sm:$0xff]  }
  0xac   : > { %2226 = vmatprep.subr.bf16.mxu0 %v2705_v7  ;;  %1438 = vmatprep.subr.bf16.mxu1 %v2455_v20  ;;  %v2536_v19 = vld [vmem:[%s2878_s30 + $0x2a0] ss:$36 sps:$4 sm:$0xff]   ;;  %v2539_v20 = vld [vmem:[%s2878_s30 + $0x2a8] ss:$36 sps:$4 sm:$0xff]  }
  0xaf   : > { %2227 = vmatpush3.bf16.msra.mxu0 %v2452_v21  ;;  %1439 = vmatpush1.bf16.msra.mxu1 %v2453_v22  ;;  %v2542_v21 = vld [vmem:[%s2878_s30 + $0x25c] ss:$36 sps:$4 sm:$0xff]  }
  0xb0   : > { %2228 = vmatprep.subr.bf16.mxu0 %v2705_v7  ;;  %1440 = vmatprep.subr.bf16.mxu1 %v2459_v23  ;;  %v2540_v22 = vld [vmem:[%s2878_s30 + $0x258] ss:$36 sps:$4 sm:$0xff]   ;;  %v2543_v23 = vld [vmem:[%s2878_s30 + $0x260] ss:$36 sps:$4 sm:$0xff]  }
  0xb3   : > { %2229 = vmatpush3.bf16.msra.mxu0 %v2456_v24  ;;  %1441 = vmatpush1.bf16.msra.mxu1 %v2457_v25 }
  0xb4   : > { %2230 = vmatprep.subr.bf16.mxu0 %v2705_v7  ;;  %1442 = vmatprep.subr.bf16.mxu1 %v2463_v26 }
  0xb7   : > { %2231 = vmatpush3.bf16.msra.mxu0 %v2460_v28  ;;  %1443 = vmatpush1.bf16.msra.mxu1 %v2461_v29 }
  0xb8   : > { %1469 = vmatprep.subr.bf16.mxu0 %v2466_v30  ;;  %1510 = vmatprep.subr.bf16.mxu1 %v2469_v31 }
  0xba   : > { %2233 = vmatmul.mubr.bf16.vlgmr.msra.gmra.mxu0 %v2928_v36  ;;  %1461 = vmatmul.mubr.bf16.vlgmr.msra.gmra.mxu1 %v3006_v35  ;;  %v2476_v36 = vld [vmem:[%s2878_s30 + $0x3b0] ss:$36 sps:$4 sm:$0xff]  }
  0xbb   : > { %1470 = vmatpush1.bf16.msra.mxu0 %v2464_v32  ;;  %1511 = vmatpush1.bf16.msra.mxu1 %v2467_v34  ;;  %v683_v32 = vlaneseq }
  0xbc   : > { %1471 = vmatprep.subr.bf16.mxu0 %v2472_v33  ;;  %1512 = vmatprep.subr.bf16.mxu1 %v2475_v37 }
  0xbd   : > { %1501 = vmatprep.mubr.bf16.mxu0 %v2704_v0  ;;  %1542 = vmatprep.mubr.bf16.mxu1 %v2704_v0  ;;  %v3081_v34 = vshrl.u32 %v683_v32, 7  ;;  %vm3133_vm12 = vcmp.lt.s32.totalorder %v683_v32, 128 }
  0xbf   : > { %1472 = vmatpush1.bf16.msra.mxu0 %v2470_v38  ;;  %1513 = vmatpush1.bf16.msra.mxu1 %v2473_v39  ;;  %v689_v33 = vsub.s32 1, %v3081_v34  ;;  %v685_v37 = vsub.s32 0, %v3081_v34  ;;  %v227_v38 = vld [vmem:[%s3087_s6] sm:$0xff] }
  0xc0   : > { %1473 = vmatprep.subr.bf16.mxu0 %v2478_v40  ;;  %1514 = vmatprep.subr.bf16.mxu1 %v2481_v41 }
  0xc1   : > { %v690_v40 = vrot.slane %v227_v38, %v689_v33 }
  0xc3   : > { %1474 = vmatpush1.bf16.msra.mxu0 %v2476_v36  ;;  %1515 = vmatpush1.bf16.msra.mxu1 %v2479_v42  ;;  %v686_v36 = vrot.slane %v227_v38, %v685_v37 }
  0xc4   : > { %1475 = vmatprep.subr.bf16.mxu0 %v2484_v43  ;;  %1516 = vmatprep.subr.bf16.mxu1 %v2487_v44 }
  0xc7   : > { %1476 = vmatpush1.bf16.msra.mxu0 %v2482_v45  ;;  %1517 = vmatpush1.bf16.msra.mxu1 %v2485_v46  ;;  %v701_v45 = vsub.s32 4, %v3081_v34  ;;  %v709_v46 = vsub.s32 6, %v3081_v34 }
  0xc8   : > { %1477 = vmatprep.subr.bf16.mxu0 %v2490_v47  ;;  %1518 = vmatprep.subr.bf16.mxu1 %v2493_v48  ;;  %v2707_v48 = vmov 1966171168  }
  0xcb   : > { %1478 = vmatpush1.bf16.msra.mxu0 %v2488_v49  ;;  %1519 = vmatpush1.bf16.msra.mxu1 %v2491_v50  ;;  %v1673_v49 = vunpack.c.l.s4 %v2707_v48  ;;  %v705_v50 = vsub.s32 5, %v3081_v34 }
  0xcc   : > { %1479 = vmatprep.subr.bf16.mxu0 %v2496_v51  ;;  %1520 = vmatprep.subr.bf16.mxu1 %v2499_v52  ;;  %v713_v51 = vsub.s32 7, %v3081_v34 }
  0xcf   : > { %1480 = vmatpush1.bf16.msra.mxu0 %v2494_v53  ;;  %1521 = vmatpush1.bf16.msra.mxu1 %v2497_v54 }
  0xd0   : > { %1481 = vmatprep.subr.bf16.mxu0 %v2502_v55  ;;  %1522 = vmatprep.subr.bf16.mxu1 %v2505_v56  ;;  %v702_v55 = vrot.slane %v227_v38, %v701_v45  ;;  %v710_v56 = vrot.slane %v227_v38, %v709_v46 }
  0xd3   : > { %1482 = vmatpush1.bf16.msra.mxu0 %v2500_v57  ;;  %1523 = vmatpush1.bf16.msra.mxu1 %v2503_v58  ;;  %v1674_v58 = vunpack.c.0.s8 %v1673_v49 }
  0xd4   : > { %1483 = vmatprep.subr.bf16.mxu0 %v2508_v59  ;;  %1524 = vmatprep.subr.bf16.mxu1 %v2511_v60  ;;  %v706_v59 = vrot.slane %v227_v38, %v705_v50 }
  0xd7   : > { %1484 = vmatpush1.bf16.msra.mxu0 %v2506_v61  ;;  %1525 = vmatpush1.bf16.msra.mxu1 %v2509_v62 }
  0xd8   : > { %1551 = vmatprep.subr.bf16.mxu0 %v2514_v63  ;;  %2236 = vmatprep.subr.bf16.mxu1 %v2705_v7 }
  0xda   : > { %1502 = vmatmul.mubr.bf16.vlgmr.msra.gmra.mxu0 %v3006_v35  ;;  %1543 = vmatmul.mubr.bf16.vlgmr.msra.gmra.mxu1 %v3006_v35 }
  0xdb   : > { %1552 = vmatpush1.bf16.msra.mxu0 %v2512_v1  ;;  %2237 = vmatpush3.bf16.msra.mxu1 %v2515_v2  ;;  %v714_v2 = vrot.slane %v227_v38, %v713_v51 }
  0xdc   : > { %1553 = vmatprep.subr.bf16.mxu0 %v2518_v3  ;;  %2238 = vmatprep.subr.bf16.mxu1 %v2705_v7 }
  0xdd   : > { %1583 = vmatprep.mubr.bf16.mxu0 %v2704_v0  ;;  %2252 = vmatprep.mubr.msk.bf16.mxu1 %vm2706_vm0, %v2705_v7  ;;  %v2527_v0 = vld [vmem:[%s2878_s30 + $0x380] ss:$36 sps:$4 sm:$0xff]  }
  0xdf   : > { %1554 = vmatpush1.bf16.msra.mxu0 %v2516_v4  ;;  %2239 = vmatpush3.bf16.msra.mxu1 %v2519_v5 }
  0xe0   : > { %1555 = vmatprep.subr.bf16.mxu0 %v2522_v6  ;;  %2240 = vmatprep.subr.bf16.mxu1 %v2705_v7  ;;  %v3111_v6 = vsub.s32 %v1674_v58, %v3081_v34 }
  0xe3   : > { %1556 = vmatpush1.bf16.msra.mxu0 %v2520_v8  ;;  %2241 = vmatpush3.bf16.msra.mxu1 %v2523_v9 }
  0xe4   : > { %1557 = vmatprep.subr.bf16.mxu0 %v2526_v10  ;;  %2242 = vmatprep.subr.bf16.mxu1 %v2705_v7 }
  0xe7   : > { %1558 = vmatpush1.bf16.msra.mxu0 %v2524_v11  ;;  %2243 = vmatpush3.bf16.msra.mxu1 %v2527_v0 }
  0xe8   : > { %1559 = vmatprep.subr.bf16.mxu0 %v2530_v12  ;;  %2244 = vmatprep.subr.bf16.mxu1 %v2705_v7 }
  0xeb   : > { %1560 = vmatpush1.bf16.msra.mxu0 %v2528_v13  ;;  %2245 = vmatpush3.bf16.msra.mxu1 %v2531_v14 }
  0xec   : > { %1561 = vmatprep.subr.bf16.mxu0 %v2534_v15  ;;  %2246 = vmatprep.subr.bf16.mxu1 %v2705_v7 }
  0xef   : > { %1562 = vmatpush1.bf16.msra.mxu0 %v2532_v16  ;;  %2247 = vmatpush3.bf16.msra.mxu1 %v2535_v17 }
  0xf0   : > { %1563 = vmatprep.subr.bf16.mxu0 %v2538_v18  ;;  %2248 = vmatprep.subr.bf16.mxu1 %v2705_v7 }
  0xf3   : > { %1564 = vmatpush1.bf16.msra.mxu0 %v2536_v19  ;;  %2249 = vmatpush3.bf16.msra.mxu1 %v2539_v20 }
  0xf4   : > { %1565 = vmatprep.subr.bf16.mxu0 %v2542_v21  ;;  %2250 = vmatprep.subr.bf16.mxu1 %v2705_v7  ;;  %v693_v7 = vsub.s32 2, %v3081_v34 }
  0xf6   : > { %v694_v39 = vrot.slane %v227_v38, %v693_v7 }
  0xf7   : > { %1566 = vmatpush1.bf16.msra.mxu0 %v2540_v22  ;;  %2251 = vmatpush3.bf16.msra.mxu1 %v2543_v23 }
  0xfa   : > { %1584 = vmatmul.mubr.bf16.vlgmr.msra.gmra.mxu0 %v3006_v35  ;;  %2253 = vmatmul.mubr.bf16.vlgmr.msra.gmra.mxu1 %v3006_v35  ;;  %v697_v35 = vsub.s32 3, %v3081_v34 }
  0xfc   : > { %v698_v41 = vrot.slane %v227_v38, %v697_v35 }
 0x13a   : > { %v762_v24 = vpop.f32.mrf.mxu0  ;;  %v803_v25 = vpop.f32.mrf.mxu1 }
 0x13b   : > { %v804_v42 = vadd.f32 %v803_v25, %v694_v39  ;;  %v763_v47 = vadd.f32 %v762_v24, %v686_v36  ;;  %v1963_v36 = vld [vmem:[%s3087_s6 + $0x24] sm:$0xff] }
 0x13c   : > { %v764_v26 = vpop.f32.mrf.mxu0  ;;  %v805_v27 = vpop.f32.mrf.mxu1  ;;  %v1390_v48 = vrot.slane %v1963_v36, %v689_v33 }
 0x13d   : > { %v765_v43 = vadd.f32 %v764_v26, %v690_v40  ;;  %v806_v44 = vadd.f32 %v805_v27, %v698_v41  ;;  %v1643_v52 = vmul.f32 0.2, %v804_v42  ;;  %vm1634_vm1 = vcmp.ge.f32.partialorder %v804_v42, 0.0 }
 0x13e   : > { %v766_v28 = vpop.f32.mrf.mxu0  ;;  %v807_v29 = vpop.f32.mrf.mxu1  ;;  %v1641_v57 = vmul.f32 0.2, %v763_v47  ;;  %vm1632_vm4 = vcmp.ge.f32.partialorder %v763_v47, 0.0 }
 0x13f   : > { %v1642_v53 = vmul.f32 0.2, %v765_v43  ;;  %v1644_v54 = vmul.f32 0.2, %v806_v44  ;;  %vm1633_vm2 = vcmp.ge.f32.partialorder %v765_v43, 0.0  ;;  %vm1635_vm3 = vcmp.ge.f32.partialorder %v806_v44, 0.0 }
 0x140   : > { %v767_v30 = vpop.f32.mrf.mxu0  ;;  %v808_v31 = vpop.f32.mrf.mxu1  ;;  %v1652_v60 = vsel %vm1634_vm1, %v804_v42, %v1643_v52  ;;  %v1650_v5 = vsel %vm1632_vm4, %v763_v47, %v1641_v57  ;;  %v1386_v42 = vrot.slane %v1963_v36, %v685_v37 }
 0x141   : > { %v1651_v61 = vsel %vm1633_vm2, %v765_v43, %v1642_v53  ;;  %v1653_v62 = vsel %vm1635_vm3, %v806_v44, %v1644_v54  ;;  %v2037_v43 = vld [vmem:[%s3087_s6 + $0x8] ss:$0 sm:$0xff] }
 0x142   : > { %v1668_v10 = vcombine.low %v1650_v5, %v1651_v61  ;;  %v1669_v11 = vcombine.low %v1652_v60, %v1653_v62 }
 0x144   : > { %v1678_v22 = vrot.slane %v1668_v10, %v3111_v6  ;;  %v1685_v23 = vrot.slane %v1669_v11, %v3111_v6 }
 0x146   : > { %v1700_v29 = vcombine.low %v1678_v22, %v1685_v23  ;;  %v1410_v23 = vrot.slane %v1963_v36, %v709_v46 }
 0x148   : > { %v1708_v39 = vrot.slane %v1700_v29, %v3111_v6 }
 0x15a   : > { %v844_v63 = vpop.f32.mrf.mxu0  ;;  %v885_v1 = vpop.f32.mrf.mxu1 }
 0x15b   : > { %v845_v3 = vadd.f32 %v844_v63, %v702_v55  ;;  %v886_v4 = vadd.f32 %v885_v1, %v710_v56 }
 0x15c   : > { %v846_v8 = vpop.f32.mrf.mxu0  ;;  %v887_v9 = vpop.f32.mrf.mxu1 }
 0x15d   : > { %vm1638_vm5 = vcmp.ge.f32.partialorder %v886_v4, 0.0  ;;  %v1647_v0 = vmul.f32 0.2, %v886_v4  ;;  %v1645_v12 = vmul.f32 0.2, %v845_v3  ;;  %v847_v13 = vadd.f32 %v846_v8, %v706_v59 }
 0x15e   : > { %v888_v14 = vadd.f32 %v887_v9, %v714_v2  ;;  %v848_v15 = vpop.f32.mrf.mxu0  ;;  %v889_v16 = vpop.f32.mrf.mxu1  ;;  %vm1636_vm6 = vcmp.ge.f32.partialorder %v845_v3, 0.0 }
 0x15f   : > { %v1656_v17 = vsel %vm1638_vm5, %v886_v4, %v1647_v0  ;;  %vm1637_vm7 = vcmp.ge.f32.partialorder %v847_v13, 0.0  ;;  %v1646_v18 = vmul.f32 0.2, %v847_v13  ;;  %v1654_v24 = vsel %vm1636_vm6, %v845_v3, %v1645_v12 }
 0x160   : > { %vm1639_vm8 = vcmp.ge.f32.partialorder %v888_v14, 0.0  ;;  %v1648_v19 = vmul.f32 0.2, %v888_v14  ;;  %v849_v20 = vpop.f32.mrf.mxu0  ;;  %v890_v21 = vpop.f32.mrf.mxu1  ;;  %v1402_v15 = vrot.slane %v1963_v36, %v701_v45  ;;  %v1414_v45 = vrot.slane %v1963_v36, %v713_v51 }
 0x161   : > { %v1655_v25 = vsel %vm1637_vm7, %v847_v13, %v1646_v18  ;;  %v1398_v13 = vrot.slane %v1963_v36, %v697_v35 }
 0x162   : > { %v1657_v26 = vsel %vm1639_vm8, %v888_v14, %v1648_v19  ;;  %v1670_v27 = vcombine.low %v1654_v24, %v1655_v25  ;;  %v1394_v14 = vrot.slane %v1963_v36, %v693_v7  ;;  %v2190_v24 = vld [vmem:[%s3087_s6 + $0x2c] ss:$0 sm:$0xff] }
 0x163   : > { %v1671_v28 = vcombine.low %v1656_v17, %v1657_v26  ;;  %v1406_v17 = vrot.slane %v1963_v36, %v705_v50 }
 0x164   : > { %v1692_v30 = vrot.slane %v1670_v27, %v3111_v6 }
 0x165   : > { %v1699_v31 = vrot.slane %v1671_v28, %v3111_v6 }
 0x167   : > { %v1701_v38 = vcombine.low %v1692_v30, %v1699_v31 }
 0x169   : > { %v1715_v40 = vrot.slane %v1701_v38, %v3111_v6 }
 0x16b   : > { %v1716_v41 = vcombine.low %v1708_v39, %v1715_v40 }
 0x16d   : > { %1733 = vst [vmem:[%s3120_s9] sm:$0xff] %v1716_v41 }
 0x17a   : > { %v926_v44 = vpop.f32.mrf.mxu0  ;;  %v1462_v47 = vpop.f32.mrf.mxu1 }
 0x17b   : > { %v927_v49 = vadd.f32 %v2037_v43, %v926_v44  ;;  %v1463_v52 = vadd.f32 %v1462_v47, %v1386_v42 }
 0x17c   : > { %v2234_v53 = vpop.f32.mrf.mxu0  ;;  %v1464_v54 = vpop.f32.mrf.mxu1 }
 0x17d   : > { %vm1640_vm9 = vcmp.ge.f32.partialorder %v927_v49, 0.0  ;;  %v1649_v55 = vmul.f32 0.2, %v927_v49  ;;  %vm1739_vm10 = vcmp.ge.f32.partialorder %v1463_v52, 0.0  ;;  %v1748_v56 = vmul.f32 0.2, %v1463_v52 }
 0x17e   : > { %v929_v57 = vpop.f32.mrf.mxu0  ;;  %v1465_v58 = vadd.f32 %v1464_v54, %v1390_v48  ;;  %v1466_v59 = vpop.f32.mrf.mxu1 }
 0x17f   : > { %v1658_v60 = vsel %vm1640_vm9, %v927_v49, %v1649_v55  ;;  %v3130_v61 = vsel %vm1739_vm10, %v1463_v52, %v1748_v56 }
 0x180   : > { %v1723_v37 = vrot.slane %v1658_v60, %v3111_v6  ;;  %vm1740_vm11 = vcmp.ge.f32.partialorder %v1465_v58, 0.0  ;;  %v1749_v62 = vmul.f32 0.2, %v1465_v58  ;;  %v2235_v33 = vpop.f32.mrf.mxu0  ;;  %v1467_v63 = vpop.f32.mrf.mxu1 }
 0x182   : > { %v1730_v2 = vrot.slane %v1723_v37, %v3111_v6  ;;  %v1758_v3 = vsel %vm1740_vm11, %v1465_v58, %v1749_v62 }
 0x183   : > { %v1775_v4 = vcombine.low %v3130_v61, %v1758_v3 }
 0x184   : > { %1738 = vst.msk [vmem:[%s3120_s9 + $0x8] sm:$0x1] %vm3133_vm12, %v1730_v2 }
 0x185   : > { %v1785_v55 = vrot.slane %v1775_v4, %v3111_v6 }
 0x19a   : > { %v1503_v5 = vpop.f32.mrf.mxu0  ;;  %v1544_v8 = vpop.f32.mrf.mxu1 }
 0x19b   : > { %v1504_v18 = vadd.f32 %v1503_v5, %v1394_v14  ;;  %v1545_v19 = vadd.f32 %v1544_v8, %v1402_v15 }
 0x19c   : > { %v1505_v9 = vpop.f32.mrf.mxu0  ;;  %v1546_v10 = vpop.f32.mrf.mxu1 }
 0x19d   : > { %v1506_v16 = vadd.f32 %v1505_v9, %v1398_v13  ;;  %v1547_v21 = vadd.f32 %v1546_v10, %v1406_v17  ;;  %v1750_v22 = vmul.f32 0.2, %v1504_v18  ;;  %vm1741_vm14 = vcmp.ge.f32.partialorder %v1504_v18, 0.0 }
 0x19e   : > { %v1507_v11 = vpop.f32.mrf.mxu0  ;;  %v1548_v0 = vpop.f32.mrf.mxu1  ;;  %v1752_v35 = vmul.f32 0.2, %v1545_v19  ;;  %vm1743_vm15 = vcmp.ge.f32.partialorder %v1545_v19, 0.0 }
 0x19f   : > { %v1751_v20 = vmul.f32 0.2, %v1506_v16  ;;  %vm1742_vm13 = vcmp.ge.f32.partialorder %v1506_v16, 0.0  ;;  %v1753_v25 = vmul.f32 0.2, %v1547_v21  ;;  %vm1744_vm0 = vcmp.ge.f32.partialorder %v1547_v21, 0.0 }
 0x1a0   : > { %v1508_v12 = vpop.f32.mrf.mxu0  ;;  %v1549_v32 = vpop.f32.mrf.mxu1  ;;  %v1759_v27 = vsel %vm1741_vm14, %v1504_v18, %v1750_v22  ;;  %v1761_v31 = vsel %vm1743_vm15, %v1545_v19, %v1752_v35 }
 0x1a1   : > { %v1760_v7 = vsel %vm1742_vm13, %v1506_v16, %v1751_v20  ;;  %v1762_v46 = vsel %vm1744_vm0, %v1547_v21, %v1753_v25 }
 0x1a2   : > { %v1776_v30 = vcombine.low %v1759_v27, %v1760_v7  ;;  %v1777_v36 = vcombine.low %v1761_v31, %v1762_v46 }
 0x1a4   : > { %v1792_v51 = vrot.slane %v1776_v30, %v3111_v6  ;;  %v1799_v59 = vrot.slane %v1777_v36, %v3111_v6 }
 0x1a6   : > { %v1807_v58 = vcombine.low %v1785_v55, %v1792_v51 }
 0x1a8   : > { %v1815_v61 = vrot.slane %v1807_v58, %v3111_v6 }
 0x1ba   : > { %v1585_v50 = vpop.f32.mrf.mxu0  ;;  %v1626_v26 = vpop.f32.mrf.mxu1 }
 0x1bb   : > { %v1586_v28 = vadd.f32 %v1585_v50, %v1410_v23  ;;  %v1627_v29 = vadd.f32 %v2190_v24, %v1626_v26 }
 0x1bc   : > { %v1587_v38 = vpop.f32.mrf.mxu0  ;;  %v2254_v39 = vpop.f32.mrf.mxu1 }
 0x1bd   : > { %v1754_v40 = vmul.f32 0.2, %v1586_v28  ;;  %v1588_v41 = vadd.f32 %v1587_v38, %v1414_v45  ;;  %vm1747_vm1 = vcmp.ge.f32.partialorder %v1627_v29, 0.0  ;;  %vm1745_vm2 = vcmp.ge.f32.partialorder %v1586_v28, 0.0 }
 0x1be   : > { %v1756_v42 = vmul.f32 0.2, %v1627_v29  ;;  %v1589_v43 = vpop.f32.mrf.mxu0  ;;  %v1629_v44 = vpop.f32.mrf.mxu1 }
 0x1bf   : > { %vm1746_vm3 = vcmp.ge.f32.partialorder %v1588_v41, 0.0  ;;  %v1755_v34 = vmul.f32 0.2, %v1588_v41  ;;  %v1763_v52 = vsel %vm1745_vm2, %v1586_v28, %v1754_v40 }
 0x1c0   : > { %v1765_v47 = vsel %vm1747_vm1, %v1627_v29, %v1756_v42  ;;  %v1590_v48 = vpop.f32.mrf.mxu0  ;;  %v2255_v49 = vpop.f32.mrf.mxu1 }
 0x1c1   : > { %v1764_v53 = vsel %vm1746_vm3, %v1588_v41, %v1755_v34  ;;  %v1830_v54 = vrot.slane %v1765_v47, %v3111_v6 }
 0x1c2   : > { %v1778_v56 = vcombine.low %v1763_v52, %v1764_v53 }
 0x1c3   : > { %v1837_v57 = vrot.slane %v1830_v54, %v3111_v6 }
 0x1c4   : > { %v1806_v60 = vrot.slane %v1778_v56, %v3111_v6 }
 0x1c5   : > { %2192 = vst.msk [vmem:[%s3120_s9 + $0x11] sm:$0x1] %vm3133_vm12, %v1837_v57 }
 0x1c6   : > { %v1808_v37 = vcombine.low %v1799_v59, %v1806_v60 }
 0x1c8   : > { %v1822_v62 = vrot.slane %v1808_v37, %v3111_v6 }
 0x1ca   : > { %v1823_v33 = vcombine.low %v1815_v61, %v1822_v62 }
 0x1cc   : > { %2191 = vst [vmem:[%s3120_s9 + $0x9] sm:$0xff] %v1823_v33 }
 0x1cd   : > { %2637 = shalt.err (!%p2634_p2)
}
 0x1ce   : > { %s2638_s20 = scalar_lea.hbm %s3171_s28, 288  ;;  %s2642_s23 = scalar_lea.hbm %s3219_s3, 1152 }
 0x1cf   : > { %p2639_p5 = scmp.ne.s32.totalorder %s3171_s28, %s2638_s20  ;;  %p2643_p6 = scmp.lt.s32.totalorder %s3171_s28, %s3219_s3 }
 0x1d0   : > { %p2644_p13 = scmp.lt.s32.totalorder %s2642_s23, %s2638_s20 }
 0x1d1   : > { %p2640_p0 = pnand %p2639_p5, %p3239_p12 }
 0x1d2   : > { %p2645_p7 = por %p2644_p13, %p2643_p6 }
 0x1d3   : > { %p2641_p3 = pneg %p2640_p0 }
 0x1d5   : > { %p2646_p11 = pnand %p2645_p7, %p2641_p3 }
 0x1d7   : > { %2649 = shalt.err (!%p2646_p11)
}
 0x1d8   : > { %s2709_s7 = smov 144   ;;  %s2710_s9 = smov 576  }
 0x1d9   : > { %s2711_s11 = smov 9  }
 0x1da   : > { %2269 = dma.vmem_to_hbm [thread:$0]  (%p3239_p12), %s3173_s17, 288, %s3171_s28, %s1844_s16, %s2709_s7, %s2710_s9, %s2711_s11  }
 0x1db PF: > { %p2291_p8 = scmp.ge.s32.totalorder %s2696_s15, 2  ;;  %s1872_s5 = sand.u32 1, %s2684_s12  }
 0x1dc   : > { %p3240_p9 = scmp.ne.s32.totalorder %s3227_s25, 0  ;;  %s1873_s22 = scalar_lea.sflag [#allocation4], %s1872_s5 }
 0x1de   : > { %p2283_p10 = pnand %p2291_p8, %p3240_p9 }
 0x1e0   : > { %p2284_p1 = pneg %p2283_p10 }
 0x1e2   : > { %2679 = dma.done.wait (%p2284_p1), %s1873_s22, 288  }
 0x1e3   : > { %2681 = vsyncadd (%p2284_p1), %s1873_s22, 4294967008  ;;  %p17_p4 = scmp.ge.s32.totalorder %s2757_s18, 6   ;;  %s3241_s12 = smov %s2688_s13 }
 0x1e4   : > { %s3242_s13 = smov %s2692_s14  ;;  %s3243_s14 = smov %s2769_s21 }
 0x1e5   : > { %s3244_s15 = smov %s2757_s18  ;;  %19 = sbr.rel (!%p17_p4) target bundleno = 6 (0x6), region = 90 }
 0x1ea   :  { %1878 = vsyncpa [#allocation3], 1 }
 0x1eb   :  { %1880 = vsyncpa [#allocation3 + $0x1], 1 }
 0x1ec   :  { %1881 = vsyncpa [#allocation6], 1 }
 0x1ed   :  { %1883 = vsyncpa [#allocation6 + $0x1], 1 }
 0x1ee   :  { %1884 = vsyncpa [#allocation4], 1 }
 0x1ef   :  { %1886 = vsyncpa [#allocation4 + $0x1], 1 }

</bundles_post_ra>
